<compile_context>
chip_gen: v6e
topology: v6e:2x2x1
jax: 0.10.0
libtpu: 0.0.40
codegen_flags: <defaults>
</compile_context>

<pallas_src>
import jax
import jax.numpy as jnp
import numpy as np
from jax.experimental import pallas as pl
from jax.experimental.pallas import tpu as pltpu

DILATIONS = (1, 3, 5, 7)
MAX_PAD = max(DILATIONS)          # = 7, shared pre-pad for all branches
N_TAPS = len(DILATIONS) * 3       # one banded matmul per (dilation, ky) pair


def _fy_kernel(xp_ref, wb_ref, bias_ref, big2_ref, b2_ref, out_ref):
  # xp_ref   : (1, Hp, Wp*Cin)        padded input, lane axis = Wp*Cin
  # wb_ref   : (12, Wp*Cin, W*Cin)    banded folded weights, one per (dilation, ky)
  # bias_ref : (1, W*Cin)             folded + lane-tiled bias (bbtm@w1 + b1)
  # big2_ref : (W*Cin, W*Cin)         block-diagonal top-level 1x1 weight
  # b2_ref   : (1, W*Cin)             lane-tiled top-level 1x1 bias
  # out_ref  : (1, H, W*Cin)          lane-dense output slab
  H = out_ref.shape[1]
  WC = out_ref.shape[2]

  xp = xp_ref[0]                                 # (Hp, Wp*Cin), loaded once
  acc = jnp.zeros((H, WC), jnp.float32)

  t = 0
  for d in DILATIONS:
    for ky in range(3):
      ho = MAX_PAD + (ky - 1) * d                # static sublane (row) offset
      rows = xp[ho:ho + H, :]                    # (H, Wp*Cin): pure row slice
      acc = acc + jnp.dot(rows, wb_ref[t],
                          preferred_element_type=jnp.float32)
      t += 1

  acc = acc + bias_ref[...]                      # single broadcast bias add
  relu = jnp.maximum(acc, 0.0)
  out = jnp.dot(relu, big2_ref[...],
                preferred_element_type=jnp.float32) + b2_ref[...]
  out_ref[0] = out.astype(out_ref.dtype)


def _fold_params(params, Cin, H, W):
  """Fold conv_1x1_btm into the tap weights and build lane-banded weights."""
  wbtm, bbtm, w1, b1, w2, b2 = params
  Cout = bbtm.shape[1]
  C4 = Cout // 4
  nD = len(DILATIONS)
  Wp = W + 2 * MAX_PAD

  # Wfold[d, ky, kx] = wbtm[d, ky, kx] (Cin x C4)  @  w1_block[d] (C4 x Cin)
  w_taps = wbtm.reshape(nD, 3, 3, Cin, C4)
  w1_blk = w1.reshape(nD, C4, Cin)
  wfold = jnp.einsum('dykim,dmo->dykio', w_taps, w1_blk)     # (4,3,3,Cin,Cin)
  wfold = wfold.reshape(N_TAPS, 3, Cin, Cin)                 # t=(d,ky), kx

  # Banded lane weight: WB[t, p*Cin+ci, w*Cin+co] = sum_kx 1[p == w + off(d,kx)]
  #                                                 * Wfold[t, kx, ci, co]
  ind = np.zeros((N_TAPS, 3, Wp, W), np.float32)
  for di, d in enumerate(DILATIONS):
    for ky in range(3):
      t = di * 3 + ky
      for kx in range(3):
        off = MAX_PAD + (kx - 1) * d
        for w in range(W):
          ind[t, kx, w + off, w] = 1.0
  wb = jnp.einsum('tkpw,tkio->tpiwo', jnp.asarray(ind), wfold)
  wb = wb.reshape(N_TAPS, Wp * Cin, W * Cin)

  # Folded bias chain, tiled along the lane axis.
  bias_fold = jnp.tile(bbtm @ w1 + b1, (1, W))               # (1, W*Cin)

  # Block-diagonal version of the top-level 1x1 conv (acts per-pixel on lanes).
  big2 = jnp.einsum('wv,io->wivo', jnp.eye(W, dtype=w2.dtype), w2)
  big2 = big2.reshape(W * Cin, W * Cin)
  b2_t = jnp.tile(b2, (1, W))                                # (1, W*Cin)

  return wb, bias_fold, big2, b2_t


def f_y_module_pallas(x_nchw, params):
  """x_nchw: (B, Cin, H, W) float32.  Returns (B, Cin, H, W)."""
  B, Cin, H, W = x_nchw.shape
  Hp, Wp = H + 2 * MAX_PAD, W + 2 * MAX_PAD
  WC = W * Cin

  wb, bias_fold, big2, b2_t = _fold_params(params, Cin, H, W)

  # NCHW -> NHWC, pre-pad by max dilation, flatten (W, Cin) into the lane axis.
  # TODO(synk): for large H,W fuse the pad with the transpose (or zero-fill the
  # halo in-kernel) to avoid the extra HBM round trip of the padded copy.
  x_nhwc = jnp.transpose(x_nchw, (0, 2, 3, 1))
  x_pad = jnp.pad(x_nhwc,
                  ((0, 0), (MAX_PAD, MAX_PAD), (MAX_PAD, MAX_PAD), (0, 0)))
  xp2 = x_pad.reshape(B, Hp, Wp * Cin)

  out = pl.pallas_call(
      _fy_kernel,
      out_shape=jax.ShapeDtypeStruct((B, H, WC), jnp.float32),
      grid=(B,),
      in_specs=[
          pl.BlockSpec((1, Hp, Wp * Cin), lambda i: (i, 0, 0)),
          pl.BlockSpec((N_TAPS, Wp * Cin, WC), lambda i: (0, 0, 0)),
          pl.BlockSpec((1, WC), lambda i: (0, 0)),
          pl.BlockSpec((WC, WC), lambda i: (0, 0)),
          pl.BlockSpec((1, WC), lambda i: (0, 0)),
      ],
      out_specs=pl.BlockSpec((1, H, WC), lambda i: (i, 0, 0)),
      compiler_params=pltpu.CompilerParams(
          dimension_semantics=("parallel",)),
  )(xp2, wb, bias_fold, big2, b2_t)

  out_nhwc = out.reshape(B, H, W, Cin)
  return jnp.transpose(out_nhwc, (0, 3, 1, 2))


def init_params(key, in_channels, out_channels):
  """Deterministic synthetic parameters (shapes follow the PyTorch __init__)."""
  c4 = out_channels // 4
  keys = jax.random.split(key, 12)
  scale = 0.1
  # 4 dilated 3x3 convs, weights stored as (branch*ky*kx, Cin, C4) = HWIO taps.
  wbtm = scale * jax.random.normal(keys[0], (4 * 9, in_channels, c4), jnp.float32)
  bbtm = scale * jax.random.normal(keys[1], (1, out_channels), jnp.float32)
  # BTM 1x1: out_channels -> in_channels
  w1 = scale * jax.random.normal(keys[2], (out_channels, in_channels), jnp.float32)
  b1 = scale * jax.random.normal(keys[3], (1, in_channels), jnp.float32)
  # top-level 1x1: in_channels -> in_channels
  w2 = scale * jax.random.normal(keys[4], (in_channels, in_channels), jnp.float32)
  b2 = scale * jax.random.normal(keys[5], (1, in_channels), jnp.float32)
  return wbtm, bbtm, w1, b1, w2, b2


def reference_forward(x_nchw, params):
  """Plain-JAX reference (lax.conv) mirroring the PyTorch forward, for checking."""
  wbtm, bbtm, w1, b1, w2, b2 = params
  Cin = x_nchw.shape[1]
  c4 = wbtm.shape[2]
  x = jnp.transpose(x_nchw, (0, 2, 3, 1))  # NHWC

  branches = []
  for bi, d in enumerate(DILATIONS):
    w = wbtm[bi * 9:(bi + 1) * 9].reshape(3, 3, Cin, c4)  # HWIO
    y = jax.lax.conv_general_dilated(
        x, w, window_strides=(1, 1), padding=[(d, d), (d, d)],
        rhs_dilation=(d, d),
        dimension_numbers=("NHWC", "HWIO", "NHWC"))
    branches.append(y)
  cat = jnp.concatenate(branches, axis=-1) + bbtm[0]
  btm = jnp.einsum("bhwc,cd->bhwd", cat, w1) + b1[0]
  relu = jnp.maximum(btm, 0.0)
  out = jnp.einsum("bhwc,cd->bhwd", relu, w2) + b2[0]
  return jnp.transpose(out, (0, 3, 1, 2))


if __name__ == "__main__":
  B, Cin, H, W = 2, 4, 16, 16
  out_channels = 8  # must be divisible by 4 (module uses out_channels // 4)

  key = jax.random.PRNGKey(0)
  k_x, k_p = jax.random.split(key)
  x = jax.random.normal(k_x, (B, Cin, H, W), jnp.float32)
  params = init_params(k_p, Cin, out_channels)

  out = jax.block_until_ready(f_y_module_pallas(x, params))
  ref = jax.block_until_ready(reference_forward(x, params))

  assert out.shape == (B, Cin, H, W)
  np.testing.assert_allclose(np.asarray(out), np.asarray(ref),
                             rtol=1e-4, atol=1e-4)
  print("KERNEL_OK")
</pallas_src>

<mosaic_0001>
module attributes {stable_mosaic.version = 11 : i64} {
  func.func @_fy_kernel(%arg0: i32, %arg1: memref<1x30x120xf32, #tpu.memory_space<vmem>>, %arg2: memref<12x120x64xf32, #tpu.memory_space<vmem>>, %arg3: memref<1x64xf32, #tpu.memory_space<vmem>>, %arg4: memref<64x64xf32, #tpu.memory_space<vmem>>, %arg5: memref<1x64xf32, #tpu.memory_space<vmem>>, %arg6: memref<1x16x64xf32, #tpu.memory_space<vmem>>) attributes {dimension_semantics = [#tpu.dimension_semantics<parallel>], iteration_bounds = array<i64: 2>, scalar_prefetch = 0 : i64, scratch_operands = 0 : i64, tpu.core_type = #tpu.core_type<tc>, window_params = [{transform_indices = @transform_0, window_bounds = array<i64: 1, 30, 120>}, {pipeline_mode = #tpu.pipeline_mode<synchronous>, transform_indices = @transform_1, window_bounds = array<i64: 12, 120, 64>}, {pipeline_mode = #tpu.pipeline_mode<synchronous>, transform_indices = @transform_2, window_bounds = array<i64: 1, 64>}, {pipeline_mode = #tpu.pipeline_mode<synchronous>, transform_indices = @transform_3, window_bounds = array<i64: 64, 64>}, {pipeline_mode = #tpu.pipeline_mode<synchronous>, transform_indices = @transform_4, window_bounds = array<i64: 1, 64>}, {transform_indices = @transform_5, window_bounds = array<i64: 1, 16, 64>}]} {
    %c0 = arith.constant 0 : index
    %c0_0 = arith.constant 0 : index
    %c0_1 = arith.constant 0 : index
    %0 = vector.load %arg1[%c0, %c0_0, %c0_1] : memref<1x30x120xf32, #tpu.memory_space<vmem>>, vector<1x30x120xf32>
    %1 = vector.shape_cast %0 : vector<1x30x120xf32> to vector<30x120xf32>
    %cst = arith.constant 0.000000e+00 : f32
    %2 = vector.broadcast %cst : f32 to vector<16x64xf32>
    %3 = vector.extract_strided_slice %1 {offsets = [6, 0], sizes = [16, 120], strides = [1, 1]} : vector<30x120xf32> to vector<16x120xf32>
    %c0_2 = arith.constant 0 : index
    %c0_3 = arith.constant 0 : index
    %c0_4 = arith.constant 0 : index
    %4 = vector.load %arg2[%c0_2, %c0_3, %c0_4] : memref<12x120x64xf32, #tpu.memory_space<vmem>>, vector<1x120x64xf32>
    %5 = vector.shape_cast %4 : vector<1x120x64xf32> to vector<120x64xf32>
    %cst_5 = arith.constant dense<0.000000e+00> : vector<16x64xf32>
    %6 = tpu.matmul %3, %5, %cst_5 {dimension_numbers = #tpu.dot_dimension_numbers<[1], [0], [0], [1], [0, 0, 1, 1], [], []>} : vector<16x120xf32>, vector<120x64xf32>, vector<16x64xf32> -> vector<16x64xf32>
    %7 = arith.addf %2, %6 : vector<16x64xf32>
    %8 = vector.extract_strided_slice %1 {offsets = [7, 0], sizes = [16, 120], strides = [1, 1]} : vector<30x120xf32> to vector<16x120xf32>
    %c1 = arith.constant 1 : index
    %c0_6 = arith.constant 0 : index
    %c0_7 = arith.constant 0 : index
    %9 = vector.load %arg2[%c1, %c0_6, %c0_7] : memref<12x120x64xf32, #tpu.memory_space<vmem>>, vector<1x120x64xf32>
    %10 = vector.shape_cast %9 : vector<1x120x64xf32> to vector<120x64xf32>
    %cst_8 = arith.constant dense<0.000000e+00> : vector<16x64xf32>
    %11 = tpu.matmul %8, %10, %cst_8 {dimension_numbers = #tpu.dot_dimension_numbers<[1], [0], [0], [1], [0, 0, 1, 1], [], []>} : vector<16x120xf32>, vector<120x64xf32>, vector<16x64xf32> -> vector<16x64xf32>
    %12 = arith.addf %7, %11 : vector<16x64xf32>
    %13 = vector.extract_strided_slice %1 {offsets = [8, 0], sizes = [16, 120], strides = [1, 1]} : vector<30x120xf32> to vector<16x120xf32>
    %c2 = arith.constant 2 : index
    %c0_9 = arith.constant 0 : index
    %c0_10 = arith.constant 0 : index
    %14 = vector.load %arg2[%c2, %c0_9, %c0_10] : memref<12x120x64xf32, #tpu.memory_space<vmem>>, vector<1x120x64xf32>
    %15 = vector.shape_cast %14 : vector<1x120x64xf32> to vector<120x64xf32>
    %cst_11 = arith.constant dense<0.000000e+00> : vector<16x64xf32>
    %16 = tpu.matmul %13, %15, %cst_11 {dimension_numbers = #tpu.dot_dimension_numbers<[1], [0], [0], [1], [0, 0, 1, 1], [], []>} : vector<16x120xf32>, vector<120x64xf32>, vector<16x64xf32> -> vector<16x64xf32>
    %17 = arith.addf %12, %16 : vector<16x64xf32>
    %18 = vector.extract_strided_slice %1 {offsets = [4, 0], sizes = [16, 120], strides = [1, 1]} : vector<30x120xf32> to vector<16x120xf32>
    %c3 = arith.constant 3 : index
    %c0_12 = arith.constant 0 : index
    %c0_13 = arith.constant 0 : index
    %19 = vector.load %arg2[%c3, %c0_12, %c0_13] : memref<12x120x64xf32, #tpu.memory_space<vmem>>, vector<1x120x64xf32>
    %20 = vector.shape_cast %19 : vector<1x120x64xf32> to vector<120x64xf32>
    %cst_14 = arith.constant dense<0.000000e+00> : vector<16x64xf32>
    %21 = tpu.matmul %18, %20, %cst_14 {dimension_numbers = #tpu.dot_dimension_numbers<[1], [0], [0], [1], [0, 0, 1, 1], [], []>} : vector<16x120xf32>, vector<120x64xf32>, vector<16x64xf32> -> vector<16x64xf32>
    %22 = arith.addf %17, %21 : vector<16x64xf32>
    %23 = vector.extract_strided_slice %1 {offsets = [7, 0], sizes = [16, 120], strides = [1, 1]} : vector<30x120xf32> to vector<16x120xf32>
    %c4 = arith.constant 4 : index
    %c0_15 = arith.constant 0 : index
    %c0_16 = arith.constant 0 : index
    %24 = vector.load %arg2[%c4, %c0_15, %c0_16] : memref<12x120x64xf32, #tpu.memory_space<vmem>>, vector<1x120x64xf32>
    %25 = vector.shape_cast %24 : vector<1x120x64xf32> to vector<120x64xf32>
    %cst_17 = arith.constant dense<0.000000e+00> : vector<16x64xf32>
    %26 = tpu.matmul %23, %25, %cst_17 {dimension_numbers = #tpu.dot_dimension_numbers<[1], [0], [0], [1], [0, 0, 1, 1], [], []>} : vector<16x120xf32>, vector<120x64xf32>, vector<16x64xf32> -> vector<16x64xf32>
    %27 = arith.addf %22, %26 : vector<16x64xf32>
    %28 = vector.extract_strided_slice %1 {offsets = [10, 0], sizes = [16, 120], strides = [1, 1]} : vector<30x120xf32> to vector<16x120xf32>
    %c5 = arith.constant 5 : index
    %c0_18 = arith.constant 0 : index
    %c0_19 = arith.constant 0 : index
    %29 = vector.load %arg2[%c5, %c0_18, %c0_19] : memref<12x120x64xf32, #tpu.memory_space<vmem>>, vector<1x120x64xf32>
    %30 = vector.shape_cast %29 : vector<1x120x64xf32> to vector<120x64xf32>
    %cst_20 = arith.constant dense<0.000000e+00> : vector<16x64xf32>
    %31 = tpu.matmul %28, %30, %cst_20 {dimension_numbers = #tpu.dot_dimension_numbers<[1], [0], [0], [1], [0, 0, 1, 1], [], []>} : vector<16x120xf32>, vector<120x64xf32>, vector<16x64xf32> -> vector<16x64xf32>
    %32 = arith.addf %27, %31 : vector<16x64xf32>
    %33 = vector.extract_strided_slice %1 {offsets = [2, 0], sizes = [16, 120], strides = [1, 1]} : vector<30x120xf32> to vector<16x120xf32>
    %c6 = arith.constant 6 : index
    %c0_21 = arith.constant 0 : index
    %c0_22 = arith.constant 0 : index
    %34 = vector.load %arg2[%c6, %c0_21, %c0_22] : memref<12x120x64xf32, #tpu.memory_space<vmem>>, vector<1x120x64xf32>
    %35 = vector.shape_cast %34 : vector<1x120x64xf32> to vector<120x64xf32>
    %cst_23 = arith.constant dense<0.000000e+00> : vector<16x64xf32>
    %36 = tpu.matmul %33, %35, %cst_23 {dimension_numbers = #tpu.dot_dimension_numbers<[1], [0], [0], [1], [0, 0, 1, 1], [], []>} : vector<16x120xf32>, vector<120x64xf32>, vector<16x64xf32> -> vector<16x64xf32>
    %37 = arith.addf %32, %36 : vector<16x64xf32>
    %38 = vector.extract_strided_slice %1 {offsets = [7, 0], sizes = [16, 120], strides = [1, 1]} : vector<30x120xf32> to vector<16x120xf32>
    %c7 = arith.constant 7 : index
    %c0_24 = arith.constant 0 : index
    %c0_25 = arith.constant 0 : index
    %39 = vector.load %arg2[%c7, %c0_24, %c0_25] : memref<12x120x64xf32, #tpu.memory_space<vmem>>, vector<1x120x64xf32>
    %40 = vector.shape_cast %39 : vector<1x120x64xf32> to vector<120x64xf32>
    %cst_26 = arith.constant dense<0.000000e+00> : vector<16x64xf32>
    %41 = tpu.matmul %38, %40, %cst_26 {dimension_numbers = #tpu.dot_dimension_numbers<[1], [0], [0], [1], [0, 0, 1, 1], [], []>} : vector<16x120xf32>, vector<120x64xf32>, vector<16x64xf32> -> vector<16x64xf32>
    %42 = arith.addf %37, %41 : vector<16x64xf32>
    %43 = vector.extract_strided_slice %1 {offsets = [12, 0], sizes = [16, 120], strides = [1, 1]} : vector<30x120xf32> to vector<16x120xf32>
    %c8 = arith.constant 8 : index
    %c0_27 = arith.constant 0 : index
    %c0_28 = arith.constant 0 : index
    %44 = vector.load %arg2[%c8, %c0_27, %c0_28] : memref<12x120x64xf32, #tpu.memory_space<vmem>>, vector<1x120x64xf32>
    %45 = vector.shape_cast %44 : vector<1x120x64xf32> to vector<120x64xf32>
    %cst_29 = arith.constant dense<0.000000e+00> : vector<16x64xf32>
    %46 = tpu.matmul %43, %45, %cst_29 {dimension_numbers = #tpu.dot_dimension_numbers<[1], [0], [0], [1], [0, 0, 1, 1], [], []>} : vector<16x120xf32>, vector<120x64xf32>, vector<16x64xf32> -> vector<16x64xf32>
    %47 = arith.addf %42, %46 : vector<16x64xf32>
    %48 = vector.extract_strided_slice %1 {offsets = [0, 0], sizes = [16, 120], strides = [1, 1]} : vector<30x120xf32> to vector<16x120xf32>
    %c9 = arith.constant 9 : index
    %c0_30 = arith.constant 0 : index
    %c0_31 = arith.constant 0 : index
    %49 = vector.load %arg2[%c9, %c0_30, %c0_31] : memref<12x120x64xf32, #tpu.memory_space<vmem>>, vector<1x120x64xf32>
    %50 = vector.shape_cast %49 : vector<1x120x64xf32> to vector<120x64xf32>
    %cst_32 = arith.constant dense<0.000000e+00> : vector<16x64xf32>
    %51 = tpu.matmul %48, %50, %cst_32 {dimension_numbers = #tpu.dot_dimension_numbers<[1], [0], [0], [1], [0, 0, 1, 1], [], []>} : vector<16x120xf32>, vector<120x64xf32>, vector<16x64xf32> -> vector<16x64xf32>
    %52 = arith.addf %47, %51 : vector<16x64xf32>
    %53 = vector.extract_strided_slice %1 {offsets = [7, 0], sizes = [16, 120], strides = [1, 1]} : vector<30x120xf32> to vector<16x120xf32>
    %c10 = arith.constant 10 : index
    %c0_33 = arith.constant 0 : index
    %c0_34 = arith.constant 0 : index
    %54 = vector.load %arg2[%c10, %c0_33, %c0_34] : memref<12x120x64xf32, #tpu.memory_space<vmem>>, vector<1x120x64xf32>
    %55 = vector.shape_cast %54 : vector<1x120x64xf32> to vector<120x64xf32>
    %cst_35 = arith.constant dense<0.000000e+00> : vector<16x64xf32>
    %56 = tpu.matmul %53, %55, %cst_35 {dimension_numbers = #tpu.dot_dimension_numbers<[1], [0], [0], [1], [0, 0, 1, 1], [], []>} : vector<16x120xf32>, vector<120x64xf32>, vector<16x64xf32> -> vector<16x64xf32>
    %57 = arith.addf %52, %56 : vector<16x64xf32>
    %58 = vector.extract_strided_slice %1 {offsets = [14, 0], sizes = [16, 120], strides = [1, 1]} : vector<30x120xf32> to vector<16x120xf32>
    %c11 = arith.constant 11 : index
    %c0_36 = arith.constant 0 : index
    %c0_37 = arith.constant 0 : index
    %59 = vector.load %arg2[%c11, %c0_36, %c0_37] : memref<12x120x64xf32, #tpu.memory_space<vmem>>, vector<1x120x64xf32>
    %60 = vector.shape_cast %59 : vector<1x120x64xf32> to vector<120x64xf32>
    %cst_38 = arith.constant dense<0.000000e+00> : vector<16x64xf32>
    %61 = tpu.matmul %58, %60, %cst_38 {dimension_numbers = #tpu.dot_dimension_numbers<[1], [0], [0], [1], [0, 0, 1, 1], [], []>} : vector<16x120xf32>, vector<120x64xf32>, vector<16x64xf32> -> vector<16x64xf32>
    %62 = arith.addf %57, %61 : vector<16x64xf32>
    %c0_39 = arith.constant 0 : index
    %c0_40 = arith.constant 0 : index
    %63 = vector.load %arg3[%c0_39, %c0_40] : memref<1x64xf32, #tpu.memory_space<vmem>>, vector<1x64xf32>
    %64 = vector.broadcast %63 : vector<1x64xf32> to vector<16x64xf32>
    %65 = arith.addf %62, %64 : vector<16x64xf32>
    %cst_41 = arith.constant 0.000000e+00 : f32
    %66 = vector.broadcast %cst_41 : f32 to vector<16x64xf32>
    %67 = arith.maximumf %65, %66 : vector<16x64xf32>
    %c0_42 = arith.constant 0 : index
    %c0_43 = arith.constant 0 : index
    %68 = vector.load %arg4[%c0_42, %c0_43] : memref<64x64xf32, #tpu.memory_space<vmem>>, vector<64x64xf32>
    %cst_44 = arith.constant dense<0.000000e+00> : vector<16x64xf32>
    %69 = tpu.matmul %67, %68, %cst_44 {dimension_numbers = #tpu.dot_dimension_numbers<[1], [0], [0], [1], [0, 0, 1, 1], [], []>} : vector<16x64xf32>, vector<64x64xf32>, vector<16x64xf32> -> vector<16x64xf32>
    %c0_45 = arith.constant 0 : index
    %c0_46 = arith.constant 0 : index
    %70 = vector.load %arg5[%c0_45, %c0_46] : memref<1x64xf32, #tpu.memory_space<vmem>>, vector<1x64xf32>
    %71 = vector.broadcast %70 : vector<1x64xf32> to vector<16x64xf32>
    %72 = arith.addf %69, %71 : vector<16x64xf32>
    %c0_47 = arith.constant 0 : index
    %c0_48 = arith.constant 0 : index
    %c0_49 = arith.constant 0 : index
    %73 = vector.load %arg6[%c0_47, %c0_48, %c0_49] : memref<1x16x64xf32, #tpu.memory_space<vmem>>, vector<1x16x64xf32>
    %74 = vector.shape_cast %73 : vector<1x16x64xf32> to vector<16x64xf32>
    %75 = vector.shape_cast %72 : vector<16x64xf32> to vector<1x16x64xf32>
    tpu.vector_store %arg6[%c0_47, %c0_48, %c0_49], %75 {strides = array<i32>} : memref<1x16x64xf32, #tpu.memory_space<vmem>>, vector<1x16x64xf32>,
    return
  }
  func.func @transform_0(%arg0: i32) -> (i32, i32, i32) {
    %c0_i32 = arith.constant 0 : i32
    %c0_i32_0 = arith.constant 0 : i32
    %c0_i32_1 = arith.constant 0 : i32
    return %arg0, %c0_i32, %c0_i32_0 : i32, i32, i32
  }
  func.func @transform_1(%arg0: i32) -> (i32, i32, i32) {
    %c0_i32 = arith.constant 0 : i32
    %c0_i32_0 = arith.constant 0 : i32
    %c0_i32_1 = arith.constant 0 : i32
    %c0_i32_2 = arith.constant 0 : i32
    return %c0_i32, %c0_i32_0, %c0_i32_1 : i32, i32, i32
  }
  func.func @transform_2(%arg0: i32) -> (i32, i32) {
    %c0_i32 = arith.constant 0 : i32
    %c0_i32_0 = arith.constant 0 : i32
    %c0_i32_1 = arith.constant 0 : i32
    return %c0_i32, %c0_i32_0 : i32, i32
  }
  func.func @transform_3(%arg0: i32) -> (i32, i32) {
    %c0_i32 = arith.constant 0 : i32
    %c0_i32_0 = arith.constant 0 : i32
    %c0_i32_1 = arith.constant 0 : i32
    return %c0_i32, %c0_i32_0 : i32, i32
  }
  func.func @transform_4(%arg0: i32) -> (i32, i32) {
    %c0_i32 = arith.constant 0 : i32
    %c0_i32_0 = arith.constant 0 : i32
    %c0_i32_1 = arith.constant 0 : i32
    return %c0_i32, %c0_i32_0 : i32, i32
  }
  func.func @transform_5(%arg0: i32) -> (i32, i32, i32) {
    %c0_i32 = arith.constant 0 : i32
    %c0_i32_0 = arith.constant 0 : i32
    %c0_i32_1 = arith.constant 0 : i32
    return %arg0, %c0_i32, %c0_i32_0 : i32, i32, i32
  }
}

</mosaic_0001>

<bundles_post_ra>
// kernel: tpu_custom_call.1
= control target key start
LH: loop header
LB: loop body
LE: loop exit
PB: predicated region body
PF: predicated region fallthrough
CT: control target
= control target key end

     0   :  { %10 = vsyncpa [#allocation3], 0  ;;  %s3352_s0 = inlined_call_operand.vmem [shape: f32[2,30,120], index: 0, kind: input, shape index: {}]   ;;  %s3353_s1 = inlined_call_operand.vmem [shape: f32[12,120,64], index: 1, kind: input, shape index: {}]   ;;  %s3354_s2 = inlined_call_operand.vmem [shape: f32[1,64], index: 2, kind: input, shape index: {}]   ;;  %s3355_s3 = inlined_call_operand.vmem [shape: f32[64,64], index: 3, kind: input, shape index: {}]   ;;  %s3356_s4 = inlined_call_operand.vmem [shape: f32[1,64], index: 4, kind: input, shape index: {}]   ;;  %s3357_s5 = inlined_call_operand.hbm [shape: f32[2,16,64], index: 5, kind: output, shape index: {}]  }
   0x1   :  { %12 = vsyncpa [#allocation3 + $0x1], 0  ;;  %s2559_s18 = smov 0   ;;  %s2561_s19 = smov 0  }
   0x2   :  { %s2563_s20 = smov 0   ;;  %s2565_s21 = smov 0  }
   0x3 LB: > { %s2580_s22 = sadd.s32 4294967295, %s2524_s21   ;;  %s1587_s23 = sadd.s32 4294967294, %s2524_s21   ;;  %s2524_s21 = sphi %s2565_s21, %s3363_s21   ;;  %s2520_s20 = sphi %s2563_s20, %s3362_s20   ;;  %s2516_s19 = sphi %s2561_s19, %s3361_s19   ;;  %s2512_s18 = sphi %s2559_s18, %s3360_s18  }
   0x4   : > { %s2584_s24 = sadd.s32 1, %s2524_s21   ;;  %s135_s25 = sadd.s32 1, %s2520_s20 }
   0x5   : > { %s132_s26 = ssub.s32 %s2524_s21, %s2584_s24  ;;  %p145_p0 = scmp.ne.s32.totalorder %s2520_s20, %s2516_s19 }
   0x6   : > { %p133_p1 = scmp.eq.s32.totalorder %s132_s26, 0  ;;  %p146_p2 = scmp.eq.s32.totalorder %s2580_s22, 1 }
   0x7   : > { %p151_p3 = scmp.ne.s32.totalorder %s2516_s19, %s2512_s18  ;;  %p152_p4 = scmp.eq.s32.totalorder %s1587_s23, 1 }
   0x8   : > { %s2595_s27 = scalar_select %p133_p1, %s2520_s20, %s135_s25  }
   0x9   : > { %p2597_p5 = por %p146_p2, %p145_p0  ;;  %p2601_p6 = por %p152_p4, %p151_p3 }
   0xa   : > { %p1590_p7 = scmp.ge.s32.totalorder %s2524_s21, 1  ;;  %p190_p8 = scmp.lt.s32.totalorder %s2524_s21, 3 }
   0xc   : > { %p191_p9 = pnand %p1590_p7, %p190_p8 }
   0xd   : > { %p218_p10 = scmp.lt.s32.totalorder (!%p191_p9), %s2580_s22, 1  ;;  %s215_s30 = sand.u32 (!%p191_p9), 1, %s2516_s19  }
   0xe   : > { %194 = sbr.rel (%p191_p9) target bundleno = 626 (0x272), region = 40  ;;  %s1793_s11 = sshll.u32 (!%p191_p9), %s2580_s22, 8 }
   0xf   : > { %s3308_s15 = scalar_lea.hbm (!%p191_p9), %s3357_s5, %s1793_s11  ;;  %s2526_s16 = smov (!%p191_p9), [#allocation2]  }
  0x13   : > { %v1608_v0 = vld [vmem:[%s3353_s1 + $0xe8] sm:$0xff]  ;;  %v241_v1 = vld [vmem:[%s3353_s1 + $0x70] sm:$0xff]  ;;  %v1607_v2 = vld [vmem:[%s3353_s1 + $0xe0] sm:$0xff]  ;;  %s219_s17 = scalar_select %p218_p10, %s2580_s22, 1  ;;  %vm347_vm0 = vcmask 1041408   ;;  %vm742_vm1 = vcmask 1045504  }
  0x14   : > { %2008 = vmatprep.subr.mxu0 %v1608_v0  ;;  %2041 = vmatprep.subr.mxu1 %v241_v1  ;;  %v240_v3 = vld [vmem:[%s3353_s1 + $0x68] sm:$0xff]  ;;  %v1606_v4 = vld [vmem:[%s3353_s1 + $0xd8] sm:$0xff]  ;;  %v239_v5 = vld [vmem:[%s3353_s1 + $0x60] sm:$0xff]  ;;  %vm261_vm2 = vcmask 1040384   ;;  %vm267_vm3 = vcmask 982016   ;;  %vm545_vm4 = vcmask 1043456  }
  0x15   : > { %2009 = vmatpush3.msra.mxu0 %v1608_v0  ;;  %2042 = vmatpush3.msra.mxu1 %v241_v1  ;;  %v1605_v6 = vld [vmem:[%s3353_s1 + $0xd0] sm:$0xff]  ;;  %v238_v7 = vld [vmem:[%s3353_s1 + $0x58] sm:$0xff]  ;;  %s1792_s6 = sshll.u32 %s219_s17, 5  ;;  %v1604_v8 = vld [vmem:[%s3353_s1 + $0xc8] sm:$0xff]  ;;  %vm1427_vm5 = vcmask 523264   ;;  %s2468_s17 = sshll.u32 %s2526_s16, 4  ;;  %s2469_s17 = int_to_ptr.vmem [resolvable:$false] %s2468_s17 }
  0x16   : > { %2010 = vmatprep.subr.mxu0 %v1607_v2  ;;  %2043 = vmatprep.subr.mxu1 %v240_v3  ;;  %v237_v9 = vld [vmem:[%s3353_s1 + $0x50] sm:$0xff]  ;;  %s2642_s13 = scalar_lea.vmem %s3352_s0, %s1792_s6  ;;  %v1603_v10 = vld [vmem:[%s3353_s1 + $0xc0] sm:$0xff]  ;;  %v236_v11 = vld [vmem:[%s3353_s1 + $0x48] sm:$0xff]  ;;  %s1591_s6 = sshll.u32 %s215_s30, 4 }
  0x17   : > { %2011 = vmatpush3.msra.mxu0 %v1607_v2  ;;  %2044 = vmatpush3.msra.mxu1 %v240_v3  ;;  %v1602_v12 = vld [vmem:[%s3353_s1 + $0xb8] sm:$0xff]  ;;  %v235_v13 = vld [vmem:[%s3353_s1 + $0x40] sm:$0xff]  ;;  %v2657_v14 = vld [vmem:[%s2642_s13 + $0x10] sm:$0xff]  ;;  %s217_s9 = scalar_lea.vmem [#allocation2], %s1591_s6  ;;  %s2470_s23 = scalar_lea.vmem %s2469_s17, 512 }
  0x18   : > { %2012 = vmatprep.subr.mxu0 %v1606_v4  ;;  %2045 = vmatprep.subr.mxu1 %v239_v5  ;;  %v2660_v15 = vld [vmem:[%s2642_s13 + $0x18] sm:$0x3f]  ;;  %v1601_v16 = vld [vmem:[%s3353_s1 + $0xb0] sm:$0xff]  ;;  %v351_v18 = vrot.slane %v2657_v14, 6  ;;  %v1600_v20 = vld [vmem:[%s3353_s1 + $0xa8] sm:$0xff]  ;;  %v744_v23 = vrot.slane %v2657_v14, 2 }
  0x19   : > { %2013 = vmatpush3.msra.mxu0 %v1606_v4  ;;  %2046 = vmatpush3.msra.mxu1 %v239_v5  ;;  %v234_v17 = vld [vmem:[%s3353_s1 + $0x38] sm:$0xff]  ;;  %v1320_v19 = vrot.slane %v2660_v15, 6  ;;  %v233_v21 = vld [vmem:[%s3353_s1 + $0x30] sm:$0xff]  ;;  %v746_v24 = vrot.slane %v2660_v15, 2  ;;  %v1599_v25 = vld [vmem:[%s3353_s1 + $0xa0] sm:$0xff]  ;;  %v265_v42 = vrot.slane %v2657_v14, 7 }
  0x1a   : > { %2014 = vmatprep.subr.mxu0 %v1605_v6  ;;  %2047 = vmatprep.subr.mxu1 %v238_v7  ;;  %v232_v26 = vld [vmem:[%s3353_s1 + $0x28] sm:$0xff]  ;;  %v1598_v28 = vld [vmem:[%s3353_s1 + $0x98] sm:$0xff]  ;;  %v231_v29 = vld [vmem:[%s3353_s1 + $0x20] sm:$0xff]  ;;  %v549_v49 = vrot.slane %v2657_v14, 4  ;;  %v1035_v50 = vrot.slane %v2660_v15, 4  ;;  %s1525_s10 = sshll.u32 %s217_s9, 4  ;;  %s3303_s10 = int_to_ptr.vmem [resolvable:$true] %s1525_s10 }
  0x1b   : > { %2015 = vmatpush3.msra.mxu0 %v1605_v6  ;;  %2048 = vmatpush3.msra.mxu1 %v238_v7  ;;  %v2679_v22 = vsel %vm347_vm0, %v351_v18, %v1320_v19  ;;  %v2692_v27 = vsel %vm742_vm1, %v744_v23, %v746_v24  ;;  %v1597_v30 = vld [vmem:[%s3353_s1 + $0x90] sm:$0xff]  ;;  %v230_v31 = vld [vmem:[%s3353_s1 + $0x18] sm:$0xff]  ;;  %v2707_v32 = vld [vmem:[%s2642_s13] sm:$0xff]  ;;  %s2464_s22 = scalar_lea.vmem %s3303_s10, 256  ;;  %p2471_p0 = scmp.lt.s32.totalorder %s3303_s10, %s2469_s17 }
  0x1c   : > { %2016 = vmatprep.subr.mxu0 %v1604_v8  ;;  %2049 = vmatprep.subr.mxu1 %v237_v9  ;;  %v2710_v33 = vld [vmem:[%s2642_s13 + $0x8] sm:$0xff]  ;;  %v229_v35 = vld [vmem:[%s3353_s1 + $0x10] sm:$0xff]  ;;  %v262_v36 = vrot.slane %v2707_v32, 7  ;;  %v1595_v38 = vld [vmem:[%s3353_s1 + $0x80] sm:$0xff]  ;;  %v348_v40 = vrot.slane %v2707_v32, 6  ;;  %v2761_v53 = vsel %vm545_vm4, %v549_v49, %v1035_v50  ;;  %s3312_s13 = scalar_lea.sflag [#allocation3], %s215_s30  ;;  %p2465_p11 = scmp.ne.s32.totalorder %s3303_s10, %s2464_s22 }
  0x1d   : > { %2017 = vmatpush3.msra.mxu0 %v1604_v8  ;;  %2050 = vmatpush3.msra.mxu1 %v237_v9  ;;  %v1596_v34 = vld [vmem:[%s3353_s1 + $0x88] sm:$0xff]  ;;  %v263_v37 = vrot.slane %v2710_v33, 7  ;;  %v349_v41 = vrot.slane %v2710_v33, 6  ;;  %v1594_v43 = vld [vmem:[%s3353_s1 + $0x78] sm:$0xff]  ;;  %v227_v44 = vld [vmem:[%s3353_s1] sm:$0xff]  ;;  %p2472_p1 = scmp.lt.s32.totalorder %s2470_s23, %s2464_s22 }
  0x1e   : > { %2018 = vmatprep.subr.mxu0 %v1603_v10  ;;  %2051 = vmatprep.subr.mxu1 %v236_v11  ;;  %v228_v39 = vld [vmem:[%s3353_s1 + $0x8] sm:$0xff]  ;;  %v1627_v51 = vld [vmem:[%s3353_s1 + $0x160] sm:$0xff]  ;;  %v1644_v52 = vld [vmem:[%s3353_s1 + $0x1d8] sm:$0xff]  ;;  %p2466_p12 = pnand %p2465_p11, %p2597_p5 }
  0x1f   : > { %2019 = vmatpush3.msra.mxu0 %v1603_v10  ;;  %2052 = vmatpush3.msra.mxu1 %v236_v11  ;;  %v2736_v45 = vsel %vm261_vm2, %v262_v36, %v263_v37  ;;  %v350_v46 = vsel %vm347_vm0, %v348_v40, %v349_v41  ;;  %v2740_v47 = vsel %vm261_vm2, %v263_v37, %v265_v42  ;;  %v1626_v54 = vld [vmem:[%s3353_s1 + $0x158] sm:$0xff]  ;;  %v1643_v55 = vld [vmem:[%s3353_s1 + $0x1d0] sm:$0xff]  ;;  %v1642_v57 = vld [vmem:[%s3353_s1 + $0x1c8] sm:$0xff]  ;;  %p2473_p2 = por %p2472_p1, %p2471_p0 }
  0x20   : > { %2020 = vmatprep.subr.mxu0 %v1602_v12  ;;  %2053 = vmatprep.subr.mxu1 %v235_v13  ;;  %v2745_v48 = vsel %vm347_vm0, %v349_v41, %v351_v18  ;;  %v1625_v56 = vld [vmem:[%s3353_s1 + $0x150] sm:$0xff]  ;;  %v1624_v58 = vld [vmem:[%s3353_s1 + $0x148] sm:$0xff]  ;;  %v1641_v59 = vld [vmem:[%s3353_s1 + $0x1c0] sm:$0xff]  ;;  %v547_v18 = vrot.slane %v2710_v33, 4  ;;  %p2467_p13 = pneg %p2466_p12 }
  0x21   : > { %2021 = vmatpush3.msra.mxu0 %v1602_v12  ;;  %2054 = vmatpush3.msra.mxu1 %v235_v13  ;;  %v1623_v60 = vld [vmem:[%s3353_s1 + $0x140] sm:$0xff]  ;;  %v1640_v61 = vld [vmem:[%s3353_s1 + $0x1b8] sm:$0xff]  ;;  %v1639_v63 = vld [vmem:[%s3353_s1 + $0x1b0] sm:$0xff] }
  0x22   : > { %2022 = vmatprep.subr.mxu0 %v1601_v16  ;;  %2055 = vmatprep.subr.mxu1 %v234_v17  ;;  %v1622_v62 = vld [vmem:[%s3353_s1 + $0x138] sm:$0xff]  ;;  %v1621_v0 = vld [vmem:[%s3353_s1 + $0x130] sm:$0xff]  ;;  %v1638_v1 = vld [vmem:[%s3353_s1 + $0x1a8] sm:$0xff]  ;;  %p2474_p3 = pnand %p2473_p2, %p2467_p13 }
  0x23   : > { %2023 = vmatpush3.msra.mxu0 %v1601_v16  ;;  %2056 = vmatpush3.msra.mxu1 %v234_v17  ;;  %v1620_v2 = vld [vmem:[%s3353_s1 + $0x128] sm:$0xff]  ;;  %v1637_v3 = vld [vmem:[%s3353_s1 + $0x1a0] sm:$0xff]  ;;  %v1636_v5 = vld [vmem:[%s3353_s1 + $0x198] sm:$0xff]  ;;  %v546_v17 = vrot.slane %v2707_v32, 4 }
  0x24   : > { %2024 = vmatprep.subr.mxu0 %v1600_v20  ;;  %2057 = vmatprep.subr.mxu1 %v233_v21  ;;  %v1619_v4 = vld [vmem:[%s3353_s1 + $0x120] sm:$0xff]  ;;  %v1618_v6 = vld [vmem:[%s3353_s1 + $0x118] sm:$0xff]  ;;  %v1635_v7 = vld [vmem:[%s3353_s1 + $0x190] sm:$0xff] }
  0x25   : > { %2025 = vmatpush3.msra.mxu0 %v1600_v20  ;;  %2058 = vmatpush3.msra.mxu1 %v233_v21  ;;  %v1617_v8 = vld [vmem:[%s3353_s1 + $0x110] sm:$0xff]  ;;  %v1634_v9 = vld [vmem:[%s3353_s1 + $0x188] sm:$0xff]  ;;  %v1633_v11 = vld [vmem:[%s3353_s1 + $0x180] sm:$0xff]  ;;  %v548_v21 = vsel %vm545_vm4, %v546_v17, %v547_v18 }
  0x26   : > { %2026 = vmatprep.subr.mxu0 %v1599_v25  ;;  %2059 = vmatprep.subr.mxu1 %v232_v26  ;;  %v1616_v10 = vld [vmem:[%s3353_s1 + $0x108] sm:$0xff]  ;;  %v1615_v12 = vld [vmem:[%s3353_s1 + $0x100] sm:$0xff]  ;;  %v1632_v13 = vld [vmem:[%s3353_s1 + $0x178] sm:$0xff] }
  0x27   : > { %2027 = vmatpush3.msra.mxu0 %v1599_v25  ;;  %2060 = vmatpush3.msra.mxu1 %v232_v26  ;;  %v1614_v15 = vld [vmem:[%s3353_s1 + $0xf8] sm:$0xff]  ;;  %v1631_v16 = vld [vmem:[%s3353_s1 + $0x170] sm:$0xff]  ;;  %v1630_v20 = vld [vmem:[%s3353_s1 + $0x168] sm:$0xff]  ;;  %v2865_v26 = vsel %vm545_vm4, %v547_v18, %v549_v49 }
  0x28   : > { %2028 = vmatprep.subr.mxu0 %v1598_v28  ;;  %2061 = vmatprep.subr.mxu1 %v231_v29  ;;  %v1613_v19 = vld [vmem:[%s3353_s1 + $0xf0] sm:$0xff]  ;;  %v1678_v25 = vld [vmem:[%s3353_s1 + $0x2c8] sm:$0xff]  ;;  %v1655_v40 = vld [vmem:[%s3353_s1 + $0x220] sm:$0xff] }
  0x29   : > { %2029 = vmatpush3.msra.mxu0 %v1598_v28  ;;  %2062 = vmatpush3.msra.mxu1 %v231_v29  ;;  %v1661_v24 = vld [vmem:[%s3353_s1 + $0x250] sm:$0xff]  ;;  %v1660_v28 = vld [vmem:[%s3353_s1 + $0x248] sm:$0xff]  ;;  %v1677_v29 = vld [vmem:[%s3353_s1 + $0x2c0] sm:$0xff] }
  0x2a   : > { %2030 = vmatprep.subr.mxu0 %v1597_v30  ;;  %2063 = vmatprep.subr.mxu1 %v230_v31  ;;  %v1657_v36 = vld [vmem:[%s3353_s1 + $0x230] sm:$0xff]  ;;  %v1674_v37 = vld [vmem:[%s3353_s1 + $0x2a8] sm:$0xff]  ;;  %v1672_v41 = vld [vmem:[%s3353_s1 + $0x298] sm:$0xff] }
  0x2b   : > { %2031 = vmatpush3.msra.mxu0 %v1597_v30  ;;  %2064 = vmatpush3.msra.mxu1 %v230_v31  ;;  %v1659_v30 = vld [vmem:[%s3353_s1 + $0x240] sm:$0xff]  ;;  %v1676_v31 = vld [vmem:[%s3353_s1 + $0x2b8] sm:$0xff]  ;;  %v1652_v49 = vld [vmem:[%s3353_s1 + $0x208] sm:$0xff] }
  0x2c   : > { %2032 = vmatprep.subr.mxu0 %v1596_v34  ;;  %2065 = vmatprep.subr.mxu1 %v229_v35  ;;  %v1654_v42 = vld [vmem:[%s3353_s1 + $0x218] sm:$0xff]  ;;  %v1669_v50 = vld [vmem:[%s3353_s1 + $0x280] sm:$0xff]  ;;  %v1703_v17 = vld [vmem:[%s3353_s1 + $0x370] sm:$0xff] }
  0x2d   : > { %2033 = vmatpush3.msra.mxu0 %v1596_v34  ;;  %2066 = vmatpush3.msra.mxu1 %v229_v35  ;;  %v1658_v34 = vld [vmem:[%s3353_s1 + $0x238] sm:$0xff]  ;;  %v1675_v35 = vld [vmem:[%s3353_s1 + $0x2b0] sm:$0xff] }
  0x2e   : > { %2034 = vmatprep.subr.mxu0 %v1595_v38  ;;  %2067 = vmatprep.subr.mxu1 %v228_v39  ;;  %v1685_v18 = vld [vmem:[%s3353_s1 + $0x2f0] sm:$0xff] }
  0x2f   : > { %2035 = vmatpush3.msra.mxu0 %v1595_v38  ;;  %2068 = vmatpush3.msra.mxu1 %v228_v39  ;;  %v1656_v38 = vld [vmem:[%s3353_s1 + $0x228] sm:$0xff]  ;;  %v1673_v39 = vld [vmem:[%s3353_s1 + $0x2a0] sm:$0xff] }
  0x30   : > { %2036 = vmatprep.subr.mxu0 %v1594_v43  ;;  %2069 = vmatprep.subr.mxu1 %v227_v44 }
  0x31   : > { %2037 = vmatpush3.msra.mxu0 %v1594_v43  ;;  %2038 = vmatprep.mubr.msk.f32.mxu0 %vm267_vm3, %v2736_v45  ;;  %v1671_v43 = vld [vmem:[%s3353_s1 + $0x290] sm:$0xff] }
  0x32   : > { %2070 = vmatpush3.msra.mxu1 %v227_v44  ;;  %2071 = vmatprep.mubr.msk.f32.mxu1 %vm267_vm3, %v350_v46  ;;  %v1653_v44 = vld [vmem:[%s3353_s1 + $0x210] sm:$0xff]  ;;  %v1670_v46 = vld [vmem:[%s3353_s1 + $0x288] sm:$0xff] }
  0x33   : > { %2039 = vmatmul.mubr.msk.f32.vlgmr.msra.gmra.mxu0 %vm267_vm3, %v2740_v47  ;;  %2072 = vmatmul.mubr.msk.f32.vlgmr.msra.gmra.mxu1 %vm267_vm3, %v2745_v48 }
  0x34   : > { %2074 = vmatprep.subr.mxu0 %v1627_v51  ;;  %2107 = vmatprep.subr.mxu1 %v1644_v52 }
  0x35   : > { %2075 = vmatpush3.msra.mxu0 %v1627_v51  ;;  %2108 = vmatpush3.msra.mxu1 %v1644_v52  ;;  %v1651_v51 = vld [vmem:[%s3353_s1 + $0x200] sm:$0xff]  ;;  %v1668_v52 = vld [vmem:[%s3353_s1 + $0x278] sm:$0xff] }
  0x36   : > { %2076 = vmatprep.subr.mxu0 %v1626_v54  ;;  %2109 = vmatprep.subr.mxu1 %v1643_v55 }
  0x37   : > { %2077 = vmatpush3.msra.mxu0 %v1626_v54  ;;  %2110 = vmatpush3.msra.mxu1 %v1643_v55  ;;  %v1650_v54 = vld [vmem:[%s3353_s1 + $0x1f8] sm:$0xff]  ;;  %v1667_v55 = vld [vmem:[%s3353_s1 + $0x270] sm:$0xff] }
  0x38   : > { %2078 = vmatprep.subr.mxu0 %v1625_v56  ;;  %2111 = vmatprep.subr.mxu1 %v1642_v57 }
  0x39   : > { %2079 = vmatpush3.msra.mxu0 %v1625_v56  ;;  %2112 = vmatpush3.msra.mxu1 %v1642_v57  ;;  %v1649_v56 = vld [vmem:[%s3353_s1 + $0x1f0] sm:$0xff]  ;;  %v1666_v57 = vld [vmem:[%s3353_s1 + $0x268] sm:$0xff] }
  0x3a   : > { %2080 = vmatprep.subr.mxu0 %v1624_v58  ;;  %2113 = vmatprep.subr.mxu1 %v1641_v59 }
  0x3b   : > { %2081 = vmatpush3.msra.mxu0 %v1624_v58  ;;  %2114 = vmatpush3.msra.mxu1 %v1641_v59  ;;  %v1648_v58 = vld [vmem:[%s3353_s1 + $0x1e8] sm:$0xff]  ;;  %v1665_v59 = vld [vmem:[%s3353_s1 + $0x260] sm:$0xff] }
  0x3c   : > { %2082 = vmatprep.subr.mxu0 %v1623_v60  ;;  %2115 = vmatprep.subr.mxu1 %v1640_v61 }
  0x3d   : > { %2083 = vmatpush3.msra.mxu0 %v1623_v60  ;;  %2116 = vmatpush3.msra.mxu1 %v1640_v61  ;;  %v743_v60 = vrot.slane %v2710_v33, 2  ;;  %v1647_v61 = vld [vmem:[%s3353_s1 + $0x1e0] sm:$0xff] }
  0x3e   : > { %2084 = vmatprep.subr.mxu0 %v1622_v62  ;;  %2117 = vmatprep.subr.mxu1 %v1639_v63 }
  0x3f   : > { %2085 = vmatpush3.msra.mxu0 %v1622_v62  ;;  %2118 = vmatpush3.msra.mxu1 %v1639_v63  ;;  %v1664_v62 = vld [vmem:[%s3353_s1 + $0x258] sm:$0xff]  ;;  %v2962_v63 = vsel %vm742_vm1, %v743_v60, %v744_v23  ;;  %v1711_v23 = vld [vmem:[%s3353_s1 + $0x3b0] sm:$0xff] }
  0x40   : > { %2086 = vmatprep.subr.mxu0 %v1621_v0  ;;  %2119 = vmatprep.subr.mxu1 %v1638_v1 }
  0x41   : > { %2087 = vmatpush3.msra.mxu0 %v1621_v0  ;;  %2120 = vmatpush3.msra.mxu1 %v1638_v1  ;;  %v1695_v0 = vld [vmem:[%s3353_s1 + $0x340] sm:$0xff]  ;;  %v1712_v1 = vld [vmem:[%s3353_s1 + $0x3b8] sm:$0xff] }
  0x42   : > { %2088 = vmatprep.subr.mxu0 %v1620_v2  ;;  %2121 = vmatprep.subr.mxu1 %v1637_v3 }
  0x43   : > { %2089 = vmatpush3.msra.mxu0 %v1620_v2  ;;  %2122 = vmatpush3.msra.mxu1 %v1637_v3  ;;  %v1693_v2 = vld [vmem:[%s3353_s1 + $0x330] sm:$0xff]  ;;  %v1710_v3 = vld [vmem:[%s3353_s1 + $0x3a8] sm:$0xff] }
  0x44   : > { %2090 = vmatprep.subr.mxu0 %v1619_v4  ;;  %2123 = vmatprep.subr.mxu1 %v1636_v5 }
  0x45   : > { %2091 = vmatpush3.msra.mxu0 %v1619_v4  ;;  %2124 = vmatpush3.msra.mxu1 %v1636_v5  ;;  %v1692_v4 = vld [vmem:[%s3353_s1 + $0x328] sm:$0xff]  ;;  %v1691_v5 = vld [vmem:[%s3353_s1 + $0x320] sm:$0xff] }
  0x46   : > { %2092 = vmatprep.subr.mxu0 %v1618_v6  ;;  %2125 = vmatprep.subr.mxu1 %v1635_v7 }
  0x47   : > { %2093 = vmatpush3.msra.mxu0 %v1618_v6  ;;  %2126 = vmatpush3.msra.mxu1 %v1635_v7  ;;  %v1708_v6 = vld [vmem:[%s3353_s1 + $0x398] sm:$0xff] }
  0x48   : > { %2094 = vmatprep.subr.mxu0 %v1617_v8  ;;  %2127 = vmatprep.subr.mxu1 %v1634_v9  ;;  %v1690_v7 = vld [vmem:[%s3353_s1 + $0x318] sm:$0xff] }
  0x49   : > { %2095 = vmatpush3.msra.mxu0 %v1617_v8  ;;  %2128 = vmatpush3.msra.mxu1 %v1634_v9  ;;  %v1707_v8 = vld [vmem:[%s3353_s1 + $0x390] sm:$0xff] }
  0x4a   : > { %2096 = vmatprep.subr.mxu0 %v1616_v10  ;;  %2129 = vmatprep.subr.mxu1 %v1633_v11  ;;  %v1689_v9 = vld [vmem:[%s3353_s1 + $0x310] sm:$0xff] }
  0x4b   : > { %2097 = vmatpush3.msra.mxu0 %v1616_v10  ;;  %2130 = vmatpush3.msra.mxu1 %v1633_v11  ;;  %v1706_v10 = vld [vmem:[%s3353_s1 + $0x388] sm:$0xff] }
  0x4c   : > { %2098 = vmatprep.subr.mxu0 %v1615_v12  ;;  %2131 = vmatprep.subr.mxu1 %v1632_v13  ;;  %v1688_v11 = vld [vmem:[%s3353_s1 + $0x308] sm:$0xff] }
  0x4d   : > { %2099 = vmatpush3.msra.mxu0 %v1615_v12  ;;  %2132 = vmatpush3.msra.mxu1 %v1632_v13  ;;  %v1705_v12 = vld [vmem:[%s3353_s1 + $0x380] sm:$0xff] }
  0x4e   : > { %2100 = vmatprep.subr.mxu0 %v1614_v15  ;;  %2133 = vmatprep.subr.mxu1 %v1631_v16  ;;  %v1687_v13 = vld [vmem:[%s3353_s1 + $0x300] sm:$0xff] }
  0x4f   : > { %2101 = vmatpush3.msra.mxu0 %v1614_v15  ;;  %2134 = vmatpush3.msra.mxu1 %v1631_v16  ;;  %v1704_v15 = vld [vmem:[%s3353_s1 + $0x378] sm:$0xff] }
  0x50   : > { %2102 = vmatprep.subr.mxu0 %v1613_v19  ;;  %2135 = vmatprep.subr.mxu1 %v1630_v20  ;;  %v1686_v16 = vld [vmem:[%s3353_s1 + $0x2f8] sm:$0xff] }
  0x51   : > { %2103 = vmatpush3.msra.mxu0 %v1613_v19  ;;  %2104 = vmatprep.mubr.msk.f32.mxu0 %vm267_vm3, %v2710_v33  ;;  %v1702_v19 = vld [vmem:[%s3353_s1 + $0x368] sm:$0xff] }
  0x52   : > { %2136 = vmatpush3.msra.mxu1 %v1630_v20  ;;  %2105 = vmatmul.mubr.msk.f32.vlgmr.msra.gmra.mxu0 %vm267_vm3, %v2657_v14  ;;  %v1694_v14 = vld [vmem:[%s3353_s1 + $0x338] sm:$0xff]  ;;  %v1684_v20 = vld [vmem:[%s3353_s1 + $0x2e8] sm:$0xff] }
  0x53   : > { %2137 = vmatprep.mubr.msk.f32.mxu1 %vm267_vm3, %v548_v21  ;;  %2140 = vmatprep.subr.mxu0 %v1661_v24  ;;  %v1701_v21 = vld [vmem:[%s3353_s1 + $0x360] sm:$0xff] }
  0x54   : > { %2173 = vmatprep.subr.mxu1 %v1678_v25  ;;  %2138 = vmatmul.mubr.msk.f32.vlgmr.msra.gmra.mxu1 %vm267_vm3, %v2865_v26 }
  0x55   : > { %2141 = vmatpush3.msra.mxu0 %v1661_v24  ;;  %2174 = vmatpush3.msra.mxu1 %v1678_v25  ;;  %v1683_v24 = vld [vmem:[%s3353_s1 + $0x2e0] sm:$0xff]  ;;  %v1700_v25 = vld [vmem:[%s3353_s1 + $0x358] sm:$0xff] }
  0x56   : > { %2142 = vmatprep.subr.mxu0 %v1660_v28  ;;  %2175 = vmatprep.subr.mxu1 %v1677_v29 }
  0x57   : > { %2143 = vmatpush3.msra.mxu0 %v1660_v28  ;;  %2176 = vmatpush3.msra.mxu1 %v1677_v29  ;;  %v845_v28 = vrot.slane %v2707_v32, 2  ;;  %v1682_v29 = vld [vmem:[%s3353_s1 + $0x2d8] sm:$0xff] }
  0x58   : > { %2144 = vmatprep.subr.mxu0 %v1659_v30  ;;  %2177 = vmatprep.subr.mxu1 %v1676_v31 }
  0x59   : > { %2145 = vmatpush3.msra.mxu0 %v1659_v30  ;;  %2178 = vmatpush3.msra.mxu1 %v1676_v31  ;;  %v1699_v30 = vld [vmem:[%s3353_s1 + $0x350] sm:$0xff] }
  0x5a   : > { %2146 = vmatprep.subr.mxu0 %v1658_v34  ;;  %2179 = vmatprep.subr.mxu1 %v1675_v35  ;;  %v1681_v31 = vld [vmem:[%s3353_s1 + $0x2d0] sm:$0xff] }
  0x5b   : > { %2147 = vmatpush3.msra.mxu0 %v1658_v34  ;;  %2180 = vmatpush3.msra.mxu1 %v1675_v35  ;;  %v1698_v34 = vld [vmem:[%s3353_s1 + $0x348] sm:$0xff]  ;;  %v846_v35 = vsel %vm742_vm1, %v845_v28, %v743_v60  ;;  %v1719_v60 = vld [vmem:[%s3353_s1 + $0x3e0] sm:$0xff] }
  0x5c   : > { %2148 = vmatprep.subr.mxu0 %v1657_v36  ;;  %2181 = vmatprep.subr.mxu1 %v1674_v37  ;;  %v1751_v28 = vld [vmem:[%s3353_s1 + $0x4c0] sm:$0xff] }
  0x5d   : > { %2149 = vmatpush3.msra.mxu0 %v1657_v36  ;;  %2182 = vmatpush3.msra.mxu1 %v1674_v37  ;;  %v1729_v36 = vld [vmem:[%s3353_s1 + $0x430] sm:$0xff]  ;;  %v1746_v37 = vld [vmem:[%s3353_s1 + $0x4a8] sm:$0xff] }
  0x5e   : > { %2150 = vmatprep.subr.mxu0 %v1656_v38  ;;  %2183 = vmatprep.subr.mxu1 %v1673_v39 }
  0x5f   : > { %2151 = vmatpush3.msra.mxu0 %v1656_v38  ;;  %2184 = vmatpush3.msra.mxu1 %v1673_v39  ;;  %v1728_v38 = vld [vmem:[%s3353_s1 + $0x428] sm:$0xff]  ;;  %v1745_v39 = vld [vmem:[%s3353_s1 + $0x4a0] sm:$0xff] }
  0x60   : > { %2152 = vmatprep.subr.mxu0 %v1655_v40  ;;  %2185 = vmatprep.subr.mxu1 %v1672_v41 }
  0x61   : > { %2153 = vmatpush3.msra.mxu0 %v1655_v40  ;;  %2186 = vmatpush3.msra.mxu1 %v1672_v41  ;;  %v1727_v40 = vld [vmem:[%s3353_s1 + $0x420] sm:$0xff]  ;;  %v1744_v41 = vld [vmem:[%s3353_s1 + $0x498] sm:$0xff] }
  0x62   : > { %2154 = vmatprep.subr.mxu0 %v1654_v42  ;;  %2187 = vmatprep.subr.mxu1 %v1671_v43 }
  0x63   : > { %2155 = vmatpush3.msra.mxu0 %v1654_v42  ;;  %2188 = vmatpush3.msra.mxu1 %v1671_v43  ;;  %v1726_v42 = vld [vmem:[%s3353_s1 + $0x418] sm:$0xff]  ;;  %v1743_v43 = vld [vmem:[%s3353_s1 + $0x490] sm:$0xff] }
  0x64   : > { %2156 = vmatprep.subr.mxu0 %v1653_v44  ;;  %2189 = vmatprep.subr.mxu1 %v1670_v46 }
  0x65   : > { %2157 = vmatpush3.msra.mxu0 %v1653_v44  ;;  %2190 = vmatpush3.msra.mxu1 %v1670_v46  ;;  %v1725_v44 = vld [vmem:[%s3353_s1 + $0x410] sm:$0xff]  ;;  %v1742_v46 = vld [vmem:[%s3353_s1 + $0x488] sm:$0xff] }
  0x66   : > { %2158 = vmatprep.subr.mxu0 %v1652_v49  ;;  %2191 = vmatprep.subr.mxu1 %v1669_v50 }
  0x67   : > { %2159 = vmatpush3.msra.mxu0 %v1652_v49  ;;  %2192 = vmatpush3.msra.mxu1 %v1669_v50  ;;  %v1724_v49 = vld [vmem:[%s3353_s1 + $0x408] sm:$0xff]  ;;  %v1741_v50 = vld [vmem:[%s3353_s1 + $0x480] sm:$0xff] }
  0x68   : > { %2160 = vmatprep.subr.mxu0 %v1651_v51  ;;  %2193 = vmatprep.subr.mxu1 %v1668_v52 }
  0x69   : > { %2161 = vmatpush3.msra.mxu0 %v1651_v51  ;;  %2194 = vmatpush3.msra.mxu1 %v1668_v52  ;;  %v1723_v51 = vld [vmem:[%s3353_s1 + $0x400] sm:$0xff]  ;;  %v1740_v52 = vld [vmem:[%s3353_s1 + $0x478] sm:$0xff] }
  0x6a   : > { %2162 = vmatprep.subr.mxu0 %v1650_v54  ;;  %2195 = vmatprep.subr.mxu1 %v1667_v55 }
  0x6b   : > { %2163 = vmatpush3.msra.mxu0 %v1650_v54  ;;  %2196 = vmatpush3.msra.mxu1 %v1667_v55  ;;  %v1722_v54 = vld [vmem:[%s3353_s1 + $0x3f8] sm:$0xff]  ;;  %v1739_v55 = vld [vmem:[%s3353_s1 + $0x470] sm:$0xff] }
  0x6c   : > { %2164 = vmatprep.subr.mxu0 %v1649_v56  ;;  %2197 = vmatprep.subr.mxu1 %v1666_v57 }
  0x6d   : > { %2165 = vmatpush3.msra.mxu0 %v1649_v56  ;;  %2198 = vmatpush3.msra.mxu1 %v1666_v57  ;;  %v1721_v56 = vld [vmem:[%s3353_s1 + $0x3f0] sm:$0xff]  ;;  %v1738_v57 = vld [vmem:[%s3353_s1 + $0x468] sm:$0xff] }
  0x6e   : > { %2166 = vmatprep.subr.mxu0 %v1648_v58  ;;  %2199 = vmatprep.subr.mxu1 %v1665_v59 }
  0x6f   : > { %2167 = vmatpush3.msra.mxu0 %v1648_v58  ;;  %2200 = vmatpush3.msra.mxu1 %v1665_v59  ;;  %v1720_v58 = vld [vmem:[%s3353_s1 + $0x3e8] sm:$0xff]  ;;  %v1737_v59 = vld [vmem:[%s3353_s1 + $0x460] sm:$0xff] }
  0x70   : > { %2168 = vmatprep.subr.mxu0 %v1647_v61  ;;  %2201 = vmatprep.subr.mxu1 %v1664_v62 }
  0x71   : > { %2169 = vmatpush3.msra.mxu0 %v1647_v61  ;;  %2170 = vmatprep.mubr.msk.f32.mxu0 %vm267_vm3, %v2736_v45  ;;  %v1736_v61 = vld [vmem:[%s3353_s1 + $0x458] sm:$0xff] }
  0x72   : > { %2202 = vmatpush3.msra.mxu1 %v1664_v62  ;;  %2171 = vmatmul.mubr.msk.f32.vlgmr.msra.gmra.mxu0 %vm267_vm3, %v2740_v47  ;;  %v1718_v62 = vld [vmem:[%s3353_s1 + $0x3d8] sm:$0xff] }
  0x73   : > { %2203 = vmatprep.mubr.msk.f32.mxu1 %vm267_vm3, %v2962_v63  ;;  %2206 = vmatprep.subr.mxu0 %v1695_v0 }
  0x74   : > { %2239 = vmatprep.subr.mxu1 %v1712_v1  ;;  %2204 = vmatmul.mubr.msk.f32.vlgmr.msra.gmra.mxu1 %vm267_vm3, %v2692_v27  ;;  %v1709_v27 = vld [vmem:[%s3353_s1 + $0x3a0] sm:$0xff] }
  0x75   : > { %2207 = vmatpush3.msra.mxu0 %v1695_v0  ;;  %2240 = vmatpush3.msra.mxu1 %v1712_v1  ;;  %v1717_v0 = vld [vmem:[%s3353_s1 + $0x3d0] sm:$0xff]  ;;  %v1734_v1 = vld [vmem:[%s3353_s1 + $0x448] sm:$0xff] }
  0x76   : > { %2208 = vmatprep.subr.mxu0 %v1694_v14  ;;  %2241 = vmatprep.subr.mxu1 %v1711_v23 }
  0x77   : > { %2209 = vmatpush3.msra.mxu0 %v1694_v14  ;;  %2242 = vmatpush3.msra.mxu1 %v1711_v23  ;;  %v1716_v14 = vld [vmem:[%s3353_s1 + $0x3c8] sm:$0xff]  ;;  %v1733_v23 = vld [vmem:[%s3353_s1 + $0x440] sm:$0xff] }
  0x78   : > { %2210 = vmatprep.subr.mxu0 %v1693_v2  ;;  %2243 = vmatprep.subr.mxu1 %v1710_v3 }
  0x79   : > { %2211 = vmatpush3.msra.mxu0 %v1693_v2  ;;  %2244 = vmatpush3.msra.mxu1 %v1710_v3  ;;  %v1715_v2 = vld [vmem:[%s3353_s1 + $0x3c0] sm:$0xff]  ;;  %v1732_v3 = vld [vmem:[%s3353_s1 + $0x438] sm:$0xff] }
  0x7a   : > { %2212 = vmatprep.subr.mxu0 %v1692_v4  ;;  %2245 = vmatprep.subr.mxu1 %v1709_v27 }
  0x7b   : > { %2213 = vmatpush3.msra.mxu0 %v1692_v4  ;;  %2246 = vmatpush3.msra.mxu1 %v1709_v27  ;;  %v1763_v4 = vld [vmem:[%s3353_s1 + $0x520] sm:$0xff]  ;;  %v1780_v27 = vld [vmem:[%s3353_s1 + $0x598] sm:$0xff] }
  0x7c   : > { %2214 = vmatprep.subr.mxu0 %v1691_v5  ;;  %2247 = vmatprep.subr.mxu1 %v1708_v6 }
  0x7d   : > { %2215 = vmatpush3.msra.mxu0 %v1691_v5  ;;  %2248 = vmatpush3.msra.mxu1 %v1708_v6  ;;  %v1762_v5 = vld [vmem:[%s3353_s1 + $0x518] sm:$0xff]  ;;  %v1760_v6 = vld [vmem:[%s3353_s1 + $0x508] sm:$0xff] }
  0x7e   : > { %2216 = vmatprep.subr.mxu0 %v1690_v7  ;;  %2249 = vmatprep.subr.mxu1 %v1707_v8 }
  0x7f   : > { %2217 = vmatpush3.msra.mxu0 %v1690_v7  ;;  %2250 = vmatpush3.msra.mxu1 %v1707_v8  ;;  %v1759_v7 = vld [vmem:[%s3353_s1 + $0x500] sm:$0xff]  ;;  %v1776_v8 = vld [vmem:[%s3353_s1 + $0x578] sm:$0xff] }
  0x80   : > { %2218 = vmatprep.subr.mxu0 %v1689_v9  ;;  %2251 = vmatprep.subr.mxu1 %v1706_v10 }
  0x81   : > { %2219 = vmatpush3.msra.mxu0 %v1689_v9  ;;  %2252 = vmatpush3.msra.mxu1 %v1706_v10  ;;  %v1758_v9 = vld [vmem:[%s3353_s1 + $0x4f8] sm:$0xff]  ;;  %v1775_v10 = vld [vmem:[%s3353_s1 + $0x570] sm:$0xff] }
  0x82   : > { %2220 = vmatprep.subr.mxu0 %v1688_v11  ;;  %2253 = vmatprep.subr.mxu1 %v1705_v12 }
  0x83   : > { %2221 = vmatpush3.msra.mxu0 %v1688_v11  ;;  %2254 = vmatpush3.msra.mxu1 %v1705_v12  ;;  %v1757_v11 = vld [vmem:[%s3353_s1 + $0x4f0] sm:$0xff]  ;;  %v1774_v12 = vld [vmem:[%s3353_s1 + $0x568] sm:$0xff] }
  0x84   : > { %2222 = vmatprep.subr.mxu0 %v1687_v13  ;;  %2255 = vmatprep.subr.mxu1 %v1704_v15 }
  0x85   : > { %2223 = vmatpush3.msra.mxu0 %v1687_v13  ;;  %2256 = vmatpush3.msra.mxu1 %v1704_v15  ;;  %v1756_v13 = vld [vmem:[%s3353_s1 + $0x4e8] sm:$0xff]  ;;  %v1773_v15 = vld [vmem:[%s3353_s1 + $0x560] sm:$0xff] }
  0x86   : > { %2224 = vmatprep.subr.mxu0 %v1686_v16  ;;  %2257 = vmatprep.subr.mxu1 %v1703_v17 }
  0x87   : > { %2225 = vmatpush3.msra.mxu0 %v1686_v16  ;;  %2258 = vmatpush3.msra.mxu1 %v1703_v17  ;;  %v1755_v16 = vld [vmem:[%s3353_s1 + $0x4e0] sm:$0xff]  ;;  %v1772_v17 = vld [vmem:[%s3353_s1 + $0x558] sm:$0xff] }
  0x88   : > { %2226 = vmatprep.subr.mxu0 %v1685_v18  ;;  %2259 = vmatprep.subr.mxu1 %v1702_v19 }
  0x89   : > { %2227 = vmatpush3.msra.mxu0 %v1685_v18  ;;  %2260 = vmatpush3.msra.mxu1 %v1702_v19  ;;  %v1754_v18 = vld [vmem:[%s3353_s1 + $0x4d8] sm:$0xff]  ;;  %v1771_v19 = vld [vmem:[%s3353_s1 + $0x550] sm:$0xff] }
  0x8a   : > { %2228 = vmatprep.subr.mxu0 %v1684_v20  ;;  %2261 = vmatprep.subr.mxu1 %v1701_v21 }
  0x8b   : > { %2229 = vmatpush3.msra.mxu0 %v1684_v20  ;;  %2262 = vmatpush3.msra.mxu1 %v1701_v21  ;;  %v1753_v20 = vld [vmem:[%s3353_s1 + $0x4d0] sm:$0xff]  ;;  %v1770_v21 = vld [vmem:[%s3353_s1 + $0x548] sm:$0xff] }
  0x8c   : > { %2230 = vmatprep.subr.mxu0 %v1683_v24  ;;  %2263 = vmatprep.subr.mxu1 %v1700_v25 }
  0x8d   : > { %2231 = vmatpush3.msra.mxu0 %v1683_v24  ;;  %2264 = vmatpush3.msra.mxu1 %v1700_v25  ;;  %v1752_v24 = vld [vmem:[%s3353_s1 + $0x4c8] sm:$0xff]  ;;  %v1769_v25 = vld [vmem:[%s3353_s1 + $0x540] sm:$0xff] }
  0x8e   : > { %2232 = vmatprep.subr.mxu0 %v1682_v29  ;;  %2265 = vmatprep.subr.mxu1 %v1699_v30 }
  0x8f   : > { %2233 = vmatpush3.msra.mxu0 %v1682_v29  ;;  %2266 = vmatpush3.msra.mxu1 %v1699_v30  ;;  %v1768_v29 = vld [vmem:[%s3353_s1 + $0x538] sm:$0xff] }
  0x90   : > { %2234 = vmatprep.subr.mxu0 %v1681_v31  ;;  %2267 = vmatprep.subr.mxu1 %v1698_v34  ;;  %v1750_v30 = vld [vmem:[%s3353_s1 + $0x4b8] sm:$0xff] }
  0x91   : > { %2235 = vmatpush3.msra.mxu0 %v1681_v31  ;;  %2236 = vmatprep.mubr.msk.f32.mxu0 %vm267_vm3, %v846_v35  ;;  %v1767_v31 = vld [vmem:[%s3353_s1 + $0x530] sm:$0xff]  ;;  %v1766_v35 = vld [vmem:[%s3353_s1 + $0x528] sm:$0xff] }
  0x92   : > { %2268 = vmatpush3.msra.mxu1 %v1698_v34  ;;  %2237 = vmatmul.mubr.msk.f32.vlgmr.msra.gmra.mxu0 %vm267_vm3, %v2962_v63  ;;  %v1735_v63 = vld [vmem:[%s3353_s1 + $0x450] sm:$0xff] }
  0x93   : > { %2269 = vmatprep.mubr.msk.f32.mxu1 %vm267_vm3, %v2736_v45  ;;  %2272 = vmatprep.subr.mxu0 %v1729_v36  ;;  %v1749_v34 = vld [vmem:[%s3353_s1 + $0x4b0] sm:$0xff] }
  0x94   : > { %2305 = vmatprep.subr.mxu1 %v1746_v37  ;;  %2270 = vmatmul.mubr.msk.f32.vlgmr.msra.gmra.mxu1 %vm267_vm3, %v2740_v47 }
  0x95   : > { %2273 = vmatpush3.msra.mxu0 %v1729_v36  ;;  %2306 = vmatpush3.msra.mxu1 %v1746_v37  ;;  %v1419_v36 = vld [vmem:[%s3355_s3 + $0x38] sm:$0xff]  ;;  %v1418_v37 = vld [vmem:[%s3355_s3 + $0x30] sm:$0xff] }
  0x96   : > { %2274 = vmatprep.subr.mxu0 %v1728_v38  ;;  %2307 = vmatprep.subr.mxu1 %v1745_v39 }
  0x97   : > { %2275 = vmatpush3.msra.mxu0 %v1728_v38  ;;  %2308 = vmatpush3.msra.mxu1 %v1745_v39  ;;  %v1413_v38 = vld [vmem:[%s3355_s3 + $0x8] sm:$0xff]  ;;  %v1412_v39 = vld [vmem:[%s3355_s3] sm:$0xff] }
  0x98   : > { %2276 = vmatprep.subr.mxu0 %v1727_v40  ;;  %2309 = vmatprep.subr.mxu1 %v1744_v41 }
  0x99   : > { %2277 = vmatpush3.msra.mxu0 %v1727_v40  ;;  %2310 = vmatpush3.msra.mxu1 %v1744_v41 }
  0x9a   : > { %2278 = vmatprep.subr.mxu0 %v1726_v42  ;;  %2311 = vmatprep.subr.mxu1 %v1743_v43 }
  0x9b   : > { %2279 = vmatpush3.msra.mxu0 %v1726_v42  ;;  %2312 = vmatpush3.msra.mxu1 %v1743_v43 }
  0x9c   : > { %2280 = vmatprep.subr.mxu0 %v1725_v44  ;;  %2313 = vmatprep.subr.mxu1 %v1742_v46 }
  0x9d   : > { %2281 = vmatpush3.msra.mxu0 %v1725_v44  ;;  %2314 = vmatpush3.msra.mxu1 %v1742_v46 }
  0x9e   : > { %2282 = vmatprep.subr.mxu0 %v1724_v49  ;;  %2315 = vmatprep.subr.mxu1 %v1741_v50 }
  0x9f   : > { %2283 = vmatpush3.msra.mxu0 %v1724_v49  ;;  %2316 = vmatpush3.msra.mxu1 %v1741_v50 }
  0xa0   : > { %2284 = vmatprep.subr.mxu0 %v1723_v51  ;;  %2317 = vmatprep.subr.mxu1 %v1740_v52 }
  0xa1   : > { %2285 = vmatpush3.msra.mxu0 %v1723_v51  ;;  %2318 = vmatpush3.msra.mxu1 %v1740_v52 }
  0xa2   : > { %2286 = vmatprep.subr.mxu0 %v1722_v54  ;;  %2319 = vmatprep.subr.mxu1 %v1739_v55 }
  0xa3   : > { %2287 = vmatpush3.msra.mxu0 %v1722_v54  ;;  %2320 = vmatpush3.msra.mxu1 %v1739_v55 }
  0xa4   : > { %2288 = vmatprep.subr.mxu0 %v1721_v56  ;;  %2321 = vmatprep.subr.mxu1 %v1738_v57 }
  0xa5   : > { %2289 = vmatpush3.msra.mxu0 %v1721_v56  ;;  %2322 = vmatpush3.msra.mxu1 %v1738_v57 }
  0xa6   : > { %2290 = vmatprep.subr.mxu0 %v1720_v58  ;;  %2323 = vmatprep.subr.mxu1 %v1737_v59 }
  0xa7   : > { %2291 = vmatpush3.msra.mxu0 %v1720_v58  ;;  %2324 = vmatpush3.msra.mxu1 %v1737_v59 }
  0xa8   : > { %2292 = vmatprep.subr.mxu0 %v1719_v60  ;;  %2325 = vmatprep.subr.mxu1 %v1736_v61 }
  0xa9   : > { %2293 = vmatpush3.msra.mxu0 %v1719_v60  ;;  %2326 = vmatpush3.msra.mxu1 %v1736_v61 }
  0xaa   : > { %2294 = vmatprep.subr.mxu0 %v1718_v62  ;;  %2327 = vmatprep.subr.mxu1 %v1735_v63 }
  0xab   : > { %2295 = vmatpush3.msra.mxu0 %v1718_v62  ;;  %2328 = vmatpush3.msra.mxu1 %v1735_v63 }
  0xac   : > { %2296 = vmatprep.subr.mxu0 %v1717_v0  ;;  %2329 = vmatprep.subr.mxu1 %v1734_v1 }
  0xad   : > { %2297 = vmatpush3.msra.mxu0 %v1717_v0  ;;  %2330 = vmatpush3.msra.mxu1 %v1734_v1 }
  0xae   : > { %2298 = vmatprep.subr.mxu0 %v1716_v14  ;;  %2331 = vmatprep.subr.mxu1 %v1733_v23 }
  0xaf   : > { %2299 = vmatpush3.msra.mxu0 %v1716_v14  ;;  %2332 = vmatpush3.msra.mxu1 %v1733_v23 }
  0xb0   : > { %2300 = vmatprep.subr.mxu0 %v1715_v2  ;;  %2333 = vmatprep.subr.mxu1 %v1732_v3 }
  0xb1   : > { %2301 = vmatpush3.msra.mxu0 %v1715_v2  ;;  %2302 = vmatprep.mubr.msk.f32.mxu0 %vm267_vm3, %v2865_v26  ;;  %v1779_v26 = vld [vmem:[%s3353_s1 + $0x590] sm:$0xff] }
  0xb2   : > { %2334 = vmatpush3.msra.mxu1 %v1732_v3  ;;  %2303 = vmatmul.mubr.msk.f32.vlgmr.msra.gmra.mxu0 %vm267_vm3, %v2761_v53  ;;  %v1761_v53 = vld [vmem:[%s3353_s1 + $0x510] sm:$0xff] }
  0xb3   : > { %2335 = vmatprep.mubr.msk.f32.mxu1 %vm267_vm3, %v2707_v32  ;;  %2338 = vmatprep.subr.mxu0 %v1763_v4  ;;  %v1778_v32 = vld [vmem:[%s3353_s1 + $0x588] sm:$0xff] }
  0xb4   : > { %2371 = vmatprep.subr.mxu1 %v1780_v27  ;;  %2336 = vmatmul.mubr.msk.f32.vlgmr.msra.gmra.mxu1 %vm267_vm3, %v2710_v33  ;;  %v1777_v33 = vld [vmem:[%s3353_s1 + $0x580] sm:$0xff] }
  0xb5   : > { %2339 = vmatpush3.msra.mxu0 %v1763_v4  ;;  %2372 = vmatpush3.msra.mxu1 %v1780_v27 }
  0xb6   : > { %2340 = vmatprep.subr.mxu0 %v1762_v5  ;;  %2373 = vmatprep.subr.mxu1 %v1779_v26 }
  0xb7   : > { %2341 = vmatpush3.msra.mxu0 %v1762_v5  ;;  %2374 = vmatpush3.msra.mxu1 %v1779_v26 }
  0xb8   : > { %2342 = vmatprep.subr.mxu0 %v1761_v53  ;;  %2375 = vmatprep.subr.mxu1 %v1778_v32 }
  0xb9   : > { %2343 = vmatpush3.msra.mxu0 %v1761_v53  ;;  %2376 = vmatpush3.msra.mxu1 %v1778_v32 }
  0xba   : > { %2344 = vmatprep.subr.mxu0 %v1760_v6  ;;  %2377 = vmatprep.subr.mxu1 %v1777_v33 }
  0xbb   : > { %2345 = vmatpush3.msra.mxu0 %v1760_v6  ;;  %2378 = vmatpush3.msra.mxu1 %v1777_v33 }
  0xbc   : > { %2346 = vmatprep.subr.mxu0 %v1759_v7  ;;  %2379 = vmatprep.subr.mxu1 %v1776_v8 }
  0xbd   : > { %2347 = vmatpush3.msra.mxu0 %v1759_v7  ;;  %2380 = vmatpush3.msra.mxu1 %v1776_v8 }
  0xbe   : > { %2348 = vmatprep.subr.mxu0 %v1758_v9  ;;  %2381 = vmatprep.subr.mxu1 %v1775_v10 }
  0xbf   : > { %2349 = vmatpush3.msra.mxu0 %v1758_v9  ;;  %2382 = vmatpush3.msra.mxu1 %v1775_v10 }
  0xc0   : > { %2350 = vmatprep.subr.mxu0 %v1757_v11  ;;  %2383 = vmatprep.subr.mxu1 %v1774_v12 }
  0xc1   : > { %2351 = vmatpush3.msra.mxu0 %v1757_v11  ;;  %2384 = vmatpush3.msra.mxu1 %v1774_v12 }
  0xc2   : > { %2352 = vmatprep.subr.mxu0 %v1756_v13  ;;  %2385 = vmatprep.subr.mxu1 %v1773_v15 }
  0xc3   : > { %2353 = vmatpush3.msra.mxu0 %v1756_v13  ;;  %2386 = vmatpush3.msra.mxu1 %v1773_v15 }
  0xc4   : > { %2354 = vmatprep.subr.mxu0 %v1755_v16  ;;  %2387 = vmatprep.subr.mxu1 %v1772_v17 }
  0xc5   : > { %2355 = vmatpush3.msra.mxu0 %v1755_v16  ;;  %2388 = vmatpush3.msra.mxu1 %v1772_v17  ;;  %v1783_v17 = vld [vmem:[%s3354_s2] ss:$0 sm:$0xff] }
  0xc6   : > { %2356 = vmatprep.subr.mxu0 %v1754_v18  ;;  %2389 = vmatprep.subr.mxu1 %v1771_v19 }
  0xc7   : > { %2357 = vmatpush3.msra.mxu0 %v1754_v18  ;;  %2390 = vmatpush3.msra.mxu1 %v1771_v19 }
  0xc8   : > { %2358 = vmatprep.subr.mxu0 %v1753_v20  ;;  %2391 = vmatprep.subr.mxu1 %v1770_v21 }
  0xc9   : > { %2359 = vmatpush3.msra.mxu0 %v1753_v20  ;;  %2392 = vmatpush3.msra.mxu1 %v1770_v21 }
  0xca   : > { %2360 = vmatprep.subr.mxu0 %v1752_v24  ;;  %2393 = vmatprep.subr.mxu1 %v1769_v25 }
  0xcb   : > { %2361 = vmatpush3.msra.mxu0 %v1752_v24  ;;  %2394 = vmatpush3.msra.mxu1 %v1769_v25 }
  0xcc   : > { %2362 = vmatprep.subr.mxu0 %v1751_v28  ;;  %2395 = vmatprep.subr.mxu1 %v1768_v29 }
  0xcd   : > { %2363 = vmatpush3.msra.mxu0 %v1751_v28  ;;  %2396 = vmatpush3.msra.mxu1 %v1768_v29  ;;  %v1784_v29 = vld [vmem:[%s3356_s4] ss:$0 sm:$0xff] }
  0xce   : > { %2364 = vmatprep.subr.mxu0 %v1750_v30  ;;  %2397 = vmatprep.subr.mxu1 %v1767_v31 }
  0xcf   : > { %2365 = vmatpush3.msra.mxu0 %v1750_v30  ;;  %2398 = vmatpush3.msra.mxu1 %v1767_v31 }
  0xd0   : > { %2366 = vmatprep.subr.mxu0 %v1749_v34  ;;  %2399 = vmatprep.subr.mxu1 %v1766_v35 }
  0xd1   : > { %2367 = vmatpush3.msra.mxu0 %v1749_v34  ;;  %2368 = vmatprep.mubr.msk.f32.mxu0 %vm267_vm3, %v2736_v45  ;;  %v1417_v45 = vld [vmem:[%s3355_s3 + $0x28] sm:$0xff] }
  0xd2   : > { %2400 = vmatpush3.msra.mxu1 %v1766_v35  ;;  %2401 = vmatprep.mubr.msk.f32.mxu1 %vm267_vm3, %v2745_v48  ;;  %v1414_v48 = vld [vmem:[%s3355_s3 + $0x10] sm:$0xff] }
  0xd3   : > { %2369 = vmatmul.mubr.msk.f32.vlgmr.msra.gmra.mxu0 %vm267_vm3, %v2740_v47  ;;  %2402 = vmatmul.mubr.msk.f32.vlgmr.msra.gmra.mxu1 %vm267_vm3, %v2679_v22  ;;  %v1416_v22 = vld [vmem:[%s3355_s3 + $0x20] sm:$0xff]  ;;  %v1415_v47 = vld [vmem:[%s3355_s3 + $0x18] sm:$0xff] }
  0xd4   : > { %2404 = vmatprep.subr.mxu0 %v1419_v36 }
  0xd5   : > { %2405 = vmatpush3.msra.mxu0 %v1419_v36 }
  0xd6   : > { %2406 = vmatprep.subr.mxu0 %v1418_v37 }
  0xd7   : > { %2407 = vmatpush3.msra.mxu0 %v1418_v37 }
  0xd8   : > { %2408 = vmatprep.subr.mxu0 %v1417_v45 }
  0xd9   : > { %2409 = vmatpush3.msra.mxu0 %v1417_v45 }
  0xda   : > { %2410 = vmatprep.subr.mxu0 %v1416_v22 }
  0xdb   : > { %2411 = vmatpush3.msra.mxu0 %v1416_v22 }
  0xdc   : > { %2412 = vmatprep.subr.mxu0 %v1415_v47 }
  0xdd   : > { %2413 = vmatpush3.msra.mxu0 %v1415_v47 }
  0xde   : > { %2414 = vmatprep.subr.mxu0 %v1414_v48 }
  0xdf   : > { %2415 = vmatpush3.msra.mxu0 %v1414_v48 }
  0xe0   : > { %2416 = vmatprep.subr.mxu0 %v1413_v38 }
  0xe1   : > { %2417 = vmatpush3.msra.mxu0 %v1413_v38 }
  0xe2   : > { %2418 = vmatprep.subr.mxu0 %v1412_v39 }
  0xe3   : > { %2419 = vmatpush3.msra.mxu0 %v1412_v39 }
  0xf3   : > { %v2040_v40 = vpop.f32.mrf.mxu0  ;;  %v2073_v41 = vpop.f32.mrf.mxu1 }
  0xf4   : > { %v429_v46 = vadd.f32 %v2073_v41, %v2040_v40 }
  0xf5   : > { %v338_v42 = vpop.f32.mrf.mxu0  ;;  %v423_v44 = vpop.f32.mrf.mxu1 }
  0xf6   : > { %v424_v51 = vadd.f32 %v423_v44, %v338_v42 }
 0x112   : > { %v2106_v43 = vpop.f32.mrf.mxu0 }
 0x113   : > { %v528_v52 = vadd.f32 %v2106_v43, %v429_v46 }
 0x114   : > { %v2139_v49 = vpop.f32.mrf.mxu1  ;;  %v518_v50 = vpop.f32.mrf.mxu0 }
 0x115   : > { %v527_v55 = vadd.f32 %v518_v50, %v424_v51  ;;  %v631_v57 = vadd.f32 %v2139_v49, %v528_v52 }
 0x116   : > { %v621_v56 = vpop.f32.mrf.mxu1 }
 0x117   : > { %v630_v60 = vadd.f32 %v621_v56, %v527_v55 }
 0x132   : > { %v2172_v54 = vpop.f32.mrf.mxu0 }
 0x133   : > { %v724_v61 = vadd.f32 %v2172_v54, %v631_v57 }
 0x134   : > { %v2205_v58 = vpop.f32.mrf.mxu1  ;;  %v714_v59 = vpop.f32.mrf.mxu0 }
 0x135   : > { %v723_v63 = vadd.f32 %v714_v59, %v630_v60  ;;  %v828_v1 = vadd.f32 %v2205_v58, %v724_v61 }
 0x136   : > { %v818_v0 = vpop.f32.mrf.mxu1 }
 0x137   : > { %v827_v2 = vadd.f32 %v818_v0, %v723_v63 }
 0x152   : > { %v2238_v62 = vpop.f32.mrf.mxu0 }
 0x153   : > { %v925_v3 = vadd.f32 %v2238_v62, %v828_v1 }
 0x154   : > { %v2271_v14 = vpop.f32.mrf.mxu1  ;;  %v915_v23 = vpop.f32.mrf.mxu0 }
 0x155   : > { %v924_v27 = vadd.f32 %v915_v23, %v827_v2  ;;  %v1018_v26 = vadd.f32 %v2271_v14, %v925_v3 }
 0x156   : > { %v1008_v5 = vpop.f32.mrf.mxu1 }
 0x157   : > { %v1017_v6 = vadd.f32 %v1008_v5, %v924_v27 }
 0x172   : > { %v2304_v4 = vpop.f32.mrf.mxu0 }
 0x173   : > { %v1115_v33 = vadd.f32 %v2304_v4, %v1018_v26 }
 0x174   : > { %v2337_v53 = vpop.f32.mrf.mxu1  ;;  %v1105_v32 = vpop.f32.mrf.mxu0 }
 0x175   : > { %v1114_v7 = vadd.f32 %v1105_v32, %v1017_v6  ;;  %v1210_v9 = vadd.f32 %v2337_v53, %v1115_v33 }
 0x176   : > { %v1200_v8 = vpop.f32.mrf.mxu1 }
 0x177   : > { %v1209_v12 = vadd.f32 %v1200_v8, %v1114_v7 }
 0x193   : > { %v2370_v10 = vpop.f32.mrf.mxu0  ;;  %v2403_v11 = vpop.f32.mrf.mxu1 }
 0x194   : > { %v1303_v13 = vadd.f32 %v2370_v10, %v1210_v9 }
 0x195   : > { %v1293_v15 = vpop.f32.mrf.mxu0  ;;  %v1390_v19 = vpop.f32.mrf.mxu1 }
 0x196   : > { %v1400_v16 = vadd.f32 %v2403_v11, %v1303_v13  ;;  %v1302_v18 = vadd.f32 %v1293_v15, %v1209_v12 }
 0x198   : > { %v1399_v20 = vadd.f32 %v1390_v19, %v1302_v18  ;;  %v1409_v21 = vadd.f32 %v1783_v17, %v1400_v16 }
 0x19a   : > { %v1408_v24 = vadd.f32 %v1783_v17, %v1399_v20  ;;  %v1411_v28 = vmax.f32 %v1409_v21, 0.0 }
 0x19c   : > { %v1410_v25 = vmax.f32 %v1408_v24, 0.0 }
 0x19e   : > { %2420 = vmatprep.mubr.msk.f32.mxu0 %vm1427_vm5, %v1410_v25 }
 0x19f   : > { %2421 = vmatmul.mubr.msk.f32.vlgmr.msra.gmra.mxu0 %vm1427_vm5, %v1411_v28 }
 0x25f   : > { %v2422_v30 = vpop.f32.mrf.mxu0 }
 0x260   : > { %v1506_v31 = vadd.f32 %v2422_v30, %v1784_v29 }
 0x261   : > { %v1500_v34 = vpop.f32.mrf.mxu0 }
 0x262   : > { %1510 = vst.msk [vmem:[%s217_s9 + $0x8] sm:$0xff] %vm1427_vm5, %v1506_v31  ;;  %v1501_v35 = vadd.f32 %v1784_v29, %v1500_v34 }
 0x264   : > { %1509 = vst.msk [vmem:[%s217_s9] sm:$0xff] %vm1427_vm5, %v1501_v35 }
 0x265   : > { %2477 = shalt.err (!%p2474_p3)
}
 0x266   : > { %s2478_s25 = scalar_lea.hbm %s3308_s15, 256  ;;  %s2482_s6 = scalar_lea.hbm %s3357_s5, 512 }
 0x267   : > { %p2479_p4 = scmp.ne.s32.totalorder %s3308_s15, %s2478_s25  ;;  %p2483_p9 = scmp.lt.s32.totalorder %s3308_s15, %s3357_s5 }
 0x268   : > { %p2484_p10 = scmp.lt.s32.totalorder %s2482_s6, %s2478_s25 }
 0x269   : > { %p2480_p7 = pnand %p2479_p4, %p2597_p5 }
 0x26a   : > { %p2485_p11 = por %p2484_p10, %p2483_p9 }
 0x26b   : > { %p2481_p8 = pneg %p2480_p7 }
 0x26d   : > { %p2486_p12 = pnand %p2485_p11, %p2481_p8 }
 0x26f   : > { %2489 = shalt.err (!%p2486_p12)
}
 0x270   : > { %s2527_s9 = smov 128   ;;  %s2528_s11 = smov 8  }
 0x271   : > { %2423 = dma.vmem_to_hbm [thread:$0]  (%p2597_p5), %s3303_s10, 256, %s3308_s15, %s3312_s13, %s2527_s9, %s2527_s9, %s2528_s11  }
 0x272 PF: > { %p2429_p13 = scmp.ge.s32.totalorder %s2524_s21, 2  ;;  %s1540_s12 = sand.u32 1, %s2512_s18  }
 0x273   : > { %s1541_s14 = scalar_lea.sflag [#allocation3], %s1540_s12 }
 0x274   : > { %p2426_p0 = pnand %p2429_p13, %p2601_p6 }
 0x276   : > { %p2427_p1 = pneg %p2426_p0 }
 0x278   : > { %2507 = dma.done.wait (%p2427_p1), %s1541_s14, 256  }
 0x279   : > { %2509 = vsyncadd (%p2427_p1), %s1541_s14, 4294967040  ;;  %p15_p2 = scmp.ge.s32.totalorder %s2584_s24, 4   ;;  %s3360_s18 = smov %s2516_s19 }
 0x27a   : > { %s3361_s19 = smov %s2520_s20  ;;  %s3362_s20 = smov %s2595_s27 }
 0x27b   : > { %s3363_s21 = smov %s2584_s24  ;;  %17 = sbr.rel (!%p15_p2) target bundleno = 3 (0x3), region = 86 }
 0x280   :  { %1546 = vsyncpa [#allocation3], 1 }
 0x281   :  { %1548 = vsyncpa [#allocation3 + $0x1], 1 }

</bundles_post_ra>
